<compile_context>
chip_gen: v7x
topology: tpu7x:2x2x1
jax: 0.10.0
libtpu: 0.0.40
codegen_flags: <defaults>
</compile_context>

<pallas_src>
import functools

import jax
import jax.numpy as jnp
from jax import lax
from jax.experimental import pallas as pl
from jax.experimental.pallas import tpu as pltpu

_INV_SQRT2 = 0.7071067811865476        # 1/sqrt(2)
_SQRT_2_OVER_PI = 0.7978845608028654   # sqrt(2/pi)
_GELU_C = 0.044715


def _gelu(h, approximate):
    if approximate:
        # tanh-approx GELU: tanh goes to the EUP (separate bundle slot), ~5 VALU ops.
        inner = _SQRT_2_OVER_PI * (h + _GELU_C * h * h * h)
        return 0.5 * h * (1.0 + jnp.tanh(inner))
    # Exact erf form (torch.nn.GELU() default numerics).
    return 0.5 * h * (1.0 + lax.erf(h * _INV_SQRT2))


def mlp_proj_kernel(x_ref, w1_ref, b1_ref, w2_ref, b2_ref, g_ref, beta_ref, o_ref,
                    *, gelu_approx):
    # MXU matmuls in the weights' dtype (bf16), f32 accumulation.  If x already
    # arrives bf16 this astype is a no-op.
    x = x_ref[...].astype(w1_ref.dtype)

    # Linear 1 (bias added in f32).
    h = jnp.dot(x, w1_ref[...], preferred_element_type=jnp.float32) + b1_ref[...]

    # GELU.
    h = _gelu(h, gelu_approx)

    # Linear 2.
    y = jnp.dot(h.astype(w2_ref.dtype), w2_ref[...],
                preferred_element_type=jnp.float32) + b2_ref[...]

    # LayerNorm over last dim, two-pass (numerically stable), eps = torch default 1e-5.
    mean = jnp.mean(y, axis=-1, keepdims=True)
    yc = y - mean
    var = jnp.mean(yc * yc, axis=-1, keepdims=True)
    out = yc * lax.rsqrt(var + 1e-5) * g_ref[...] + beta_ref[...]

    o_ref[...] = out.astype(o_ref.dtype)


def _cdiv(a, b):
    return -(-a // b)


def _round_up(x, m):
    return -(-x // m) * m


def _choose_block_b(batch, max_block_b):
    """Batch tile: big enough to amortize per-step overhead, >=2 even tiles on v7x."""
    if batch < 256 and batch <= max_block_b:
        # Single full-extent block (allowed regardless of 8-alignment): no pipeline
        # machinery, no masked overhang for tiny batches.
        return batch
    # >= 2 tiles, even count, so the "parallel" batch axis feeds both v7x TensorCores
    # (neutral on single-TC v5e/v6e).
    n_tiles = max(_cdiv(batch, max_block_b), 2)
    n_tiles += n_tiles % 2
    tile = _cdiv(batch, n_tiles)
    mult = 128 if tile >= 128 else 8
    return _round_up(tile, mult)


def mlp_proj(x, w1, b1, w2, b2, gamma, beta, *, max_block_b=1024, out_dtype=None,
             gelu_approx=True):
    """Fused MLPProjModel forward.

    x:      [B, clip_dim]  (bf16 recommended -- halves input HBM traffic)
    w1:     [clip_dim, clip_dim]   (pre-cast to bf16 at parameter-setup time)
    b1:     [1, clip_dim]          (f32)
    w2:     [clip_dim, cross_dim]  (pre-cast to bf16)
    b2, gamma, beta: [1, cross_dim] (f32)
    """
    B, clip_dim = x.shape
    cross_dim = w2.shape[1]
    out_dtype = x.dtype if out_dtype is None else out_dtype

    block_b = _choose_block_b(B, max_block_b)
    grid = (_cdiv(B, block_b),)   # cdiv grid: partial last block is masked, no pad/slice

    kernel = functools.partial(mlp_proj_kernel, gelu_approx=gelu_approx)

    return pl.pallas_call(
        kernel,
        out_shape=jax.ShapeDtypeStruct((B, cross_dim), out_dtype),
        grid_spec=pl.GridSpec(
            grid=grid,
            in_specs=[
                pl.BlockSpec((block_b, clip_dim), lambda i: (i, 0)),   # x tile
                pl.BlockSpec((clip_dim, clip_dim), lambda i: (0, 0)),  # W1 (grid-invariant)
                pl.BlockSpec((1, clip_dim), lambda i: (0, 0)),         # b1
                pl.BlockSpec((clip_dim, cross_dim), lambda i: (0, 0)),  # W2
                pl.BlockSpec((1, cross_dim), lambda i: (0, 0)),        # b2
                pl.BlockSpec((1, cross_dim), lambda i: (0, 0)),        # LN gamma
                pl.BlockSpec((1, cross_dim), lambda i: (0, 0)),        # LN beta
            ],
            out_specs=pl.BlockSpec((block_b, cross_dim), lambda i: (i, 0)),
        ),
        compiler_params=pltpu.CompilerParams(
            dimension_semantics=("parallel",),
            vmem_limit_bytes=32 * 1024 * 1024,   # safe on v7x (64 MiB) and v5e/v6e
        ),
    )(x, w1, b1, w2, b2, gamma, beta)


# --------------------------------------------------------------------------- references
def reference_exact_f32(x, w1, b1, w2, b2, gamma, beta):
    """Pure-f32 reference matching torch MLPProjModel (erf GELU)."""
    xf = x.astype(jnp.float32)
    h = xf @ w1.astype(jnp.float32) + b1
    h = 0.5 * h * (1.0 + lax.erf(h * _INV_SQRT2))
    y = h @ w2.astype(jnp.float32) + b2
    mean = jnp.mean(y, axis=-1, keepdims=True)
    var = jnp.mean((y - mean) ** 2, axis=-1, keepdims=True)
    return (y - mean) * lax.rsqrt(var + 1e-5) * gamma + beta


def reference_matched(x, w1, b1, w2, b2, gamma, beta, *, gelu_approx=True):
    """Reference with the same bf16-matmul / f32-accumulate / tanh-GELU config as the kernel."""
    h = jnp.dot(x.astype(w1.dtype), w1, preferred_element_type=jnp.float32) + b1
    h = _gelu(h, gelu_approx)
    y = jnp.dot(h.astype(w2.dtype), w2, preferred_element_type=jnp.float32) + b2
    mean = jnp.mean(y, axis=-1, keepdims=True)
    var = jnp.mean((y - mean) ** 2, axis=-1, keepdims=True)
    return (y - mean) * lax.rsqrt(var + 1e-5) * gamma + beta


if __name__ == "__main__":
    clip_embeddings_dim = 256
    cross_attention_dim = 128

    key = jax.random.PRNGKey(0)
    kx, kw1, kb1, kw2, kb2, kx2 = jax.random.split(key, 6)

    # Deterministic synthetic parameters (f32 master copies).
    w1 = jax.random.normal(kw1, (clip_embeddings_dim, clip_embeddings_dim), jnp.float32) * 0.02
    b1 = jax.random.normal(kb1, (1, clip_embeddings_dim), jnp.float32) * 0.01
    w2 = jax.random.normal(kw2, (clip_embeddings_dim, cross_attention_dim), jnp.float32) * 0.02
    b2 = jax.random.normal(kb2, (1, cross_attention_dim), jnp.float32) * 0.01
    gamma = jnp.ones((1, cross_attention_dim), jnp.float32)
    beta = jnp.zeros((1, cross_attention_dim), jnp.float32)

    # One-time parameter-setup cast (not per call): MXU weights in bf16.
    w1_bf = w1.astype(jnp.bfloat16)
    w2_bf = w2.astype(jnp.bfloat16)

    # Case 1: tiny batch, bf16 input/output, single full-extent block.
    B = 8
    x = jax.random.normal(kx, (B, clip_embeddings_dim), jnp.float32).astype(jnp.bfloat16)
    out = jax.block_until_ready(mlp_proj(x, w1_bf, b1, w2_bf, b2, gamma, beta))
    assert out.shape == (B, cross_attention_dim) and out.dtype == jnp.bfloat16
    ref_m = reference_matched(x, w1_bf, b1, w2_bf, b2, gamma, beta)
    assert jnp.allclose(out.astype(jnp.float32), ref_m, atol=2e-2, rtol=2e-2), \
        "mismatch vs matched (bf16 / tanh-GELU) reference"
    ref_e = reference_exact_f32(x, w1, b1, w2, b2, gamma, beta)
    assert jnp.allclose(out.astype(jnp.float32), ref_e, atol=8e-2, rtol=8e-2), \
        "mismatch vs torch-exact f32 reference"

    # Case 2: odd batch (300), f32 input/output, cdiv grid with a masked partial last
    # block -> exercises the no-pad path and >= 2 "parallel" steps (v7x dual-TC).
    B2 = 300
    x2 = jax.random.normal(kx2, (B2, clip_embeddings_dim), jnp.float32)
    out2 = jax.block_until_ready(
        mlp_proj(x2, w1_bf, b1, w2_bf, b2, gamma, beta, out_dtype=jnp.float32))
    assert out2.shape == (B2, cross_attention_dim)
    ref2_m = reference_matched(x2, w1_bf, b1, w2_bf, b2, gamma, beta)
    assert jnp.allclose(out2, ref2_m, atol=5e-3, rtol=5e-3), \
        "mismatch vs matched reference (partial-block path)"
    ref2_e = reference_exact_f32(x2, w1, b1, w2, b2, gamma, beta)
    assert jnp.allclose(out2, ref2_e, atol=8e-2, rtol=8e-2), \
        "mismatch vs torch-exact f32 reference (partial-block path)"

    # Case 3: torch-exact numerics flag (erf GELU) still works.
    out3 = jax.block_until_ready(
        mlp_proj(x2, w1_bf, b1, w2_bf, b2, gamma, beta, out_dtype=jnp.float32,
                 gelu_approx=False))
    assert jnp.allclose(out3, ref2_e, atol=5e-2, rtol=5e-2), \
        "mismatch vs torch-exact f32 reference (erf path)"

    print("KERNEL_OK")
</pallas_src>

<mosaic_0001>
module attributes {stable_mosaic.version = 11 : i64} {
  func.func @mlp_proj_kernel(%arg0: i32, %arg1: memref<8x256xbf16, #tpu.memory_space<vmem>>, %arg2: memref<256x256xbf16, #tpu.memory_space<vmem>>, %arg3: memref<1x256xf32, #tpu.memory_space<vmem>>, %arg4: memref<256x128xbf16, #tpu.memory_space<vmem>>, %arg5: memref<1x128xf32, #tpu.memory_space<vmem>>, %arg6: memref<1x128xf32, #tpu.memory_space<vmem>>, %arg7: memref<1x128xf32, #tpu.memory_space<vmem>>, %arg8: memref<8x128xbf16, #tpu.memory_space<vmem>>) attributes {dimension_semantics = [#tpu.dimension_semantics<parallel>], iteration_bounds = array<i64: 1>, scalar_prefetch = 0 : i64, scratch_operands = 0 : i64, tpu.core_type = #tpu.core_type<tc>, window_params = [{transform_indices = @transform_0, window_bounds = array<i64: 8, 256>}, {pipeline_mode = #tpu.pipeline_mode<synchronous>, transform_indices = @transform_1, window_bounds = array<i64: 256, 256>}, {pipeline_mode = #tpu.pipeline_mode<synchronous>, transform_indices = @transform_2, window_bounds = array<i64: 1, 256>}, {pipeline_mode = #tpu.pipeline_mode<synchronous>, transform_indices = @transform_3, window_bounds = array<i64: 256, 128>}, {pipeline_mode = #tpu.pipeline_mode<synchronous>, transform_indices = @transform_4, window_bounds = array<i64: 1, 128>}, {pipeline_mode = #tpu.pipeline_mode<synchronous>, transform_indices = @transform_5, window_bounds = array<i64: 1, 128>}, {pipeline_mode = #tpu.pipeline_mode<synchronous>, transform_indices = @transform_6, window_bounds = array<i64: 1, 128>}, {transform_indices = @transform_7, window_bounds = array<i64: 8, 128>}]} {
    %c0 = arith.constant 0 : index
    %c0_0 = arith.constant 0 : index
    %0 = vector.load %arg1[%c0, %c0_0] : memref<8x256xbf16, #tpu.memory_space<vmem>>, vector<8x256xbf16>
    %c0_1 = arith.constant 0 : index
    %c0_2 = arith.constant 0 : index
    %1 = vector.load %arg2[%c0_1, %c0_2] : memref<256x256xbf16, #tpu.memory_space<vmem>>, vector<256x256xbf16>
    %cst = arith.constant dense<0.000000e+00> : vector<8x256xf32>
    %2 = tpu.matmul %0, %1, %cst {dimension_numbers = #tpu.dot_dimension_numbers<[1], [0], [0], [1], [0, 0, 1, 1], [], []>} : vector<8x256xbf16>, vector<256x256xbf16>, vector<8x256xf32> -> vector<8x256xf32>
    %c0_3 = arith.constant 0 : index
    %c0_4 = arith.constant 0 : index
    %3 = vector.load %arg3[%c0_3, %c0_4] : memref<1x256xf32, #tpu.memory_space<vmem>>, vector<1x256xf32>
    %4 = vector.broadcast %3 : vector<1x256xf32> to vector<8x256xf32>
    %5 = arith.addf %2, %4 : vector<8x256xf32>
    %cst_5 = arith.constant 4.471500e-02 : f32
    %6 = vector.broadcast %cst_5 : f32 to vector<8x256xf32>
    %7 = arith.mulf %6, %5 : vector<8x256xf32>
    %8 = arith.mulf %7, %5 : vector<8x256xf32>
    %9 = arith.mulf %8, %5 : vector<8x256xf32>
    %10 = arith.addf %5, %9 : vector<8x256xf32>
    %cst_6 = arith.constant 0.797884583 : f32
    %11 = vector.broadcast %cst_6 : f32 to vector<8x256xf32>
    %12 = arith.mulf %11, %10 : vector<8x256xf32>
    %cst_7 = arith.constant 5.000000e-01 : f32
    %13 = vector.broadcast %cst_7 : f32 to vector<8x256xf32>
    %14 = arith.mulf %13, %5 : vector<8x256xf32>
    %15 = math.tanh %12 : vector<8x256xf32>
    %cst_8 = arith.constant 1.000000e+00 : f32
    %16 = vector.broadcast %cst_8 : f32 to vector<8x256xf32>
    %17 = arith.addf %16, %15 : vector<8x256xf32>
    %18 = arith.mulf %14, %17 : vector<8x256xf32>
    %19 = arith.truncf %18 : vector<8x256xf32> to vector<8x256xbf16>
    %c0_9 = arith.constant 0 : index
    %c0_10 = arith.constant 0 : index
    %20 = vector.load %arg4[%c0_9, %c0_10] : memref<256x128xbf16, #tpu.memory_space<vmem>>, vector<256x128xbf16>
    %cst_11 = arith.constant dense<0.000000e+00> : vector<8x128xf32>
    %21 = tpu.matmul %19, %20, %cst_11 {dimension_numbers = #tpu.dot_dimension_numbers<[1], [0], [0], [1], [0, 0, 1, 1], [], []>} : vector<8x256xbf16>, vector<256x128xbf16>, vector<8x128xf32> -> vector<8x128xf32>
    %c0_12 = arith.constant 0 : index
    %c0_13 = arith.constant 0 : index
    %22 = vector.load %arg5[%c0_12, %c0_13] : memref<1x128xf32, #tpu.memory_space<vmem>>, vector<1x128xf32>
    %23 = vector.broadcast %22 : vector<1x128xf32> to vector<8x128xf32>
    %24 = arith.addf %21, %23 : vector<8x128xf32>
    %cst_14 = arith.constant dense<0.000000e+00> : vector<8xf32>
    %25 = vector.multi_reduction <add>, %24, %cst_14 [1] : vector<8x128xf32> to vector<8xf32>
    %26 = vector.shape_cast %25 : vector<8xf32> to vector<8x1xf32>
    %cst_15 = arith.constant 1.280000e+02 : f32
    %27 = vector.broadcast %cst_15 : f32 to vector<8x1xf32>
    %28 = arith.divf %26, %27 : vector<8x1xf32>
    %29 = vector.broadcast %28 : vector<8x1xf32> to vector<8x128xf32>
    %30 = arith.subf %24, %29 : vector<8x128xf32>
    %31 = arith.mulf %30, %30 : vector<8x128xf32>
    %cst_16 = arith.constant dense<0.000000e+00> : vector<8xf32>
    %32 = vector.multi_reduction <add>, %31, %cst_16 [1] : vector<8x128xf32> to vector<8xf32>
    %33 = vector.shape_cast %32 : vector<8xf32> to vector<8x1xf32>
    %cst_17 = arith.constant 1.280000e+02 : f32
    %34 = vector.broadcast %cst_17 : f32 to vector<8x1xf32>
    %35 = arith.divf %33, %34 : vector<8x1xf32>
    %cst_18 = arith.constant 9.99999974E-6 : f32
    %36 = vector.broadcast %cst_18 : f32 to vector<8x1xf32>
    %37 = arith.addf %35, %36 : vector<8x1xf32>
    %38 = math.rsqrt %37 : vector<8x1xf32>
    %39 = vector.broadcast %38 : vector<8x1xf32> to vector<8x128xf32>
    %40 = arith.mulf %30, %39 : vector<8x128xf32>
    %c0_19 = arith.constant 0 : index
    %c0_20 = arith.constant 0 : index
    %41 = vector.load %arg6[%c0_19, %c0_20] : memref<1x128xf32, #tpu.memory_space<vmem>>, vector<1x128xf32>
    %42 = vector.broadcast %41 : vector<1x128xf32> to vector<8x128xf32>
    %43 = arith.mulf %40, %42 : vector<8x128xf32>
    %c0_21 = arith.constant 0 : index
    %c0_22 = arith.constant 0 : index
    %44 = vector.load %arg7[%c0_21, %c0_22] : memref<1x128xf32, #tpu.memory_space<vmem>>, vector<1x128xf32>
    %45 = vector.broadcast %44 : vector<1x128xf32> to vector<8x128xf32>
    %46 = arith.addf %43, %45 : vector<8x128xf32>
    %47 = arith.truncf %46 : vector<8x128xf32> to vector<8x128xbf16>
    %c0_23 = arith.constant 0 : index
    %c0_24 = arith.constant 0 : index
    %48 = vector.load %arg8[%c0_23, %c0_24] : memref<8x128xbf16, #tpu.memory_space<vmem>>, vector<8x128xbf16>
    tpu.vector_store %arg8[%c0_23, %c0_24], %47 {strides = array<i32>} : memref<8x128xbf16, #tpu.memory_space<vmem>>, vector<8x128xbf16>,
    return
  }
  func.func @transform_0(%arg0: i32) -> (i32, i32) {
    %c0_i32 = arith.constant 0 : i32
    %c0_i32_0 = arith.constant 0 : i32
    return %arg0, %c0_i32 : i32, i32
  }
  func.func @transform_1(%arg0: i32) -> (i32, i32) {
    %c0_i32 = arith.constant 0 : i32
    %c0_i32_0 = arith.constant 0 : i32
    %c0_i32_1 = arith.constant 0 : i32
    return %c0_i32, %c0_i32_0 : i32, i32
  }
  func.func @transform_2(%arg0: i32) -> (i32, i32) {
    %c0_i32 = arith.constant 0 : i32
    %c0_i32_0 = arith.constant 0 : i32
    %c0_i32_1 = arith.constant 0 : i32
    return %c0_i32, %c0_i32_0 : i32, i32
  }
  func.func @transform_3(%arg0: i32) -> (i32, i32) {
    %c0_i32 = arith.constant 0 : i32
    %c0_i32_0 = arith.constant 0 : i32
    %c0_i32_1 = arith.constant 0 : i32
    return %c0_i32, %c0_i32_0 : i32, i32
  }
  func.func @transform_4(%arg0: i32) -> (i32, i32) {
    %c0_i32 = arith.constant 0 : i32
    %c0_i32_0 = arith.constant 0 : i32
    %c0_i32_1 = arith.constant 0 : i32
    return %c0_i32, %c0_i32_0 : i32, i32
  }
  func.func @transform_5(%arg0: i32) -> (i32, i32) {
    %c0_i32 = arith.constant 0 : i32
    %c0_i32_0 = arith.constant 0 : i32
    %c0_i32_1 = arith.constant 0 : i32
    return %c0_i32, %c0_i32_0 : i32, i32
  }
  func.func @transform_6(%arg0: i32) -> (i32, i32) {
    %c0_i32 = arith.constant 0 : i32
    %c0_i32_0 = arith.constant 0 : i32
    %c0_i32_1 = arith.constant 0 : i32
    return %c0_i32, %c0_i32_0 : i32, i32
  }
  func.func @transform_7(%arg0: i32) -> (i32, i32) {
    %c0_i32 = arith.constant 0 : i32
    %c0_i32_0 = arith.constant 0 : i32
    return %arg0, %c0_i32 : i32, i32
  }
}

</mosaic_0001>

<bundles_post_ra>
// kernel: tpu_custom_call.1
= control target key start
LH: loop header
LB: loop body
LE: loop exit
PB: predicated region body
PF: predicated region fallthrough
CT: control target
= control target key end

     0   :  { %12 = vsyncpa [#allocation3], 0  ;;  %s918_s0 = inlined_call_operand.hbm [shape: bf16[8,256], index: 0, kind: input, shape index: {}]   ;;  %s919_s1 = inlined_call_operand.hbm [shape: bf16[256,256], index: 1, kind: input, shape index: {}]   ;;  %s920_s2 = inlined_call_operand.vmem [shape: f32[1,256], index: 2, kind: input, shape index: {}]   ;;  %s921_s3 = inlined_call_operand.hbm [shape: bf16[256,128], index: 3, kind: input, shape index: {}]   ;;  %s922_s4 = inlined_call_operand.vmem [shape: f32[1,128], index: 4, kind: input, shape index: {}]   ;;  %s923_s5 = inlined_call_operand.vmem [shape: f32[1,128], index: 5, kind: input, shape index: {}]   ;;  %s924_s6 = inlined_call_operand.vmem [shape: f32[1,128], index: 6, kind: input, shape index: {}]   ;;  %s925_s7 = inlined_call_operand.hbm [shape: bf16[8,128], index: 7, kind: output, shape index: {}]  }
   0x1   :  { %13 = vsyncpa [#allocation6], 0 }
   0x2   :  { %14 = vsyncpa [#allocation4], 0  ;;  %s810_s24 = smov [#allocation5]   ;;  %s716_s28 = scalar_lea.hbm %s919_s1, 4096 }
   0x3   :  { %s30_s25 = sshll.u32 %s810_s24, 4  ;;  %p717_p0 = scmp.ne.s32.totalorder %s919_s1, %s716_s28  ;;  %s31_s25 = int_to_ptr.vmem [resolvable:$true] %s30_s25 }
   0x4   :  { %p720_p1 = scmp.lt.u32.totalorder %s716_s28, %s919_s1 }
   0x6   :  { %p722_p2 = pnand %p720_p1, %p717_p0 }
   0x8   :  { %725 = shalt.err (!%p722_p2)
}
   0x9   :  { %s726_s10 = scalar_lea.vmem %s31_s25, 4096  ;;  %p731_p4 = scmp.lt.s32.totalorder %s31_s25, %s31_s25 }
   0xa   :  { %p727_p3 = scmp.ne.s32.totalorder %s31_s25, %s726_s10  ;;  %p732_p5 = scmp.lt.s32.totalorder %s726_s10, %s726_s10 }
   0xc   :  { %p733_p6 = por %p732_p5, %p731_p4 }
   0xe   :  { %p734_p7 = pnand %p733_p6, %p727_p3 }
  0x10   :  { %737 = shalt.err (!%p734_p7)
}
  0x11   :  { %s811_s11 = smov 128   ;;  %s812_s12 = smov 8  }
  0x12   :  { %36 = dma.hbm_to_vmem [thread:$0]  %s919_s1, 4096, %s31_s25, [#allocation6], %s811_s11, %s811_s11, %s812_s12  }
  0x13   :  { %s813_s15 = smov [#allocation2]   ;;  %s814_s17 = smov [#allocation7]  }
  0x14   :  { %s21_s16 = sshll.u32 %s813_s15, 4  ;;  %s44_s18 = sshll.u32 %s814_s17, 4  ;;  %s22_s16 = int_to_ptr.vmem [resolvable:$true] %s21_s16  ;;  %s45_s18 = int_to_ptr.vmem [resolvable:$true] %s44_s18 }
  0x15   :  { %s738_s21 = scalar_lea.hbm %s918_s0, 128 }
  0x16   :  { %p739_p8 = scmp.ne.s32.totalorder %s918_s0, %s738_s21  ;;  %p742_p9 = scmp.lt.u32.totalorder %s738_s21, %s918_s0 }
  0x18   :  { %p744_p10 = pnand %p742_p9, %p739_p8 }
  0x1a   :  { %747 = shalt.err (!%p744_p10)
}
  0x1b   :  { %s748_s1 = scalar_lea.vmem %s22_s16, 128  ;;  %p753_p12 = scmp.lt.s32.totalorder %s22_s16, %s22_s16 }
  0x1c   :  { %p749_p11 = scmp.ne.s32.totalorder %s22_s16, %s748_s1  ;;  %p754_p13 = scmp.lt.s32.totalorder %s748_s1, %s748_s1 }
  0x1e   :  { %p755_p0 = por %p754_p13, %p753_p12 }
  0x20   :  { %p756_p1 = pnand %p755_p0, %p749_p11 }
  0x22   :  { %759 = shalt.err (!%p756_p1)
}
  0x23   :  { %24 = dma.hbm_to_vmem [thread:$0]  %s918_s0, 128, %s22_s16, [#allocation3]  }
  0x24   :  { %s760_s30 = scalar_lea.hbm %s921_s3, 2048 }
  0x25   :  { %p761_p2 = scmp.ne.s32.totalorder %s921_s3, %s760_s30  ;;  %p764_p3 = scmp.lt.u32.totalorder %s760_s30, %s921_s3 }
  0x27   :  { %p766_p4 = pnand %p764_p3, %p761_p2 }
  0x29   :  { %769 = shalt.err (!%p766_p4)
}
  0x2a   :  { %s770_s12 = scalar_lea.vmem %s45_s18, 2048  ;;  %p775_p6 = scmp.lt.s32.totalorder %s45_s18, %s45_s18 }
  0x2b   :  { %p771_p5 = scmp.ne.s32.totalorder %s45_s18, %s770_s12  ;;  %p776_p7 = scmp.lt.s32.totalorder %s770_s12, %s770_s12 }
  0x2d   :  { %p777_p8 = por %p776_p7, %p775_p6 }
  0x2f   :  { %p778_p9 = pnand %p777_p8, %p771_p5 }
  0x31   :  { %781 = shalt.err (!%p778_p9)
}
  0x32   :  { %s815_s0 = smov 64   ;;  %s816_s13 = smov 4  }
  0x33   :  { %50 = dma.hbm_to_vmem [thread:$0]  %s921_s3, 2048, %s45_s18, [#allocation6], %s815_s0, %s815_s0, %s816_s13  }
  0x34   :  { %804 = dma.done.wait [#allocation3], 128  }
  0x35   :  { %805 = vsyncadd [#allocation3], 4294967168 }
  0x36   :  { %806 = dma.done.wait [#allocation6], 6144  }
  0x37   :  { %807 = vsyncadd [#allocation6], 4294961152  ;;  %v644_v0 = vld [vmem:[#allocation5 + $0x4] ss:$8 sps:$4 sm:$0xff]   ;;  %v646_v1 = vld [vmem:[#allocation5] ss:$8 sps:$4 sm:$0xff]   ;;  %v102_v51 = vlaneseq }
  0x38   :  { %279 = vmatprep.subr.bf16.mxu0 %v644_v0  ;;  %v647_v2 = vld [vmem:[#allocation5 + $0x14] ss:$8 sps:$4 sm:$0xff]   ;;  %v649_v3 = vld [vmem:[#allocation5 + $0x10] ss:$8 sps:$4 sm:$0xff]   ;;  %v650_v4 = vld [vmem:[#allocation5 + $0x24] ss:$8 sps:$4 sm:$0xff]  }
  0x39   :  { %280 = vmatpush1.bf16.msra.mxu0 %v646_v1  ;;  %v652_v5 = vld [vmem:[#allocation5 + $0x20] ss:$8 sps:$4 sm:$0xff]   ;;  %v653_v6 = vld [vmem:[#allocation5 + $0x34] ss:$8 sps:$4 sm:$0xff]   ;;  %v655_v7 = vld [vmem:[#allocation5 + $0x30] ss:$8 sps:$4 sm:$0xff]  }
  0x3a   :  { %281 = vmatprep.subr.bf16.mxu0 %v647_v2  ;;  %v656_v8 = vld [vmem:[#allocation5 + $0x44] ss:$8 sps:$4 sm:$0xff]   ;;  %v658_v9 = vld [vmem:[#allocation5 + $0x40] ss:$8 sps:$4 sm:$0xff]   ;;  %v659_v10 = vld [vmem:[#allocation5 + $0x54] ss:$8 sps:$4 sm:$0xff]  }
  0x3b   :  { %v661_v11 = vld [vmem:[#allocation5 + $0x50] ss:$8 sps:$4 sm:$0xff]   ;;  %v662_v12 = vld [vmem:[#allocation5 + $0x64] ss:$8 sps:$4 sm:$0xff]   ;;  %v664_v13 = vld [vmem:[#allocation5 + $0x60] ss:$8 sps:$4 sm:$0xff]  }
  0x3c   :  { %v67_v14 = vld [vmem:[#allocation2] sm:$0xff]  ;;  %v668_v18 = vld [vmem:[#allocation5 + $0x84] ss:$8 sps:$4 sm:$0xff]   ;;  %v670_v19 = vld [vmem:[#allocation5 + $0x80] ss:$8 sps:$4 sm:$0xff]   ;;  %v103_v52 = vshrl.u32 %v102_v51, 7 }
  0x3d   :  { %282 = vmatpush1.bf16.msra.mxu0 %v649_v3  ;;  %v665_v15 = vld [vmem:[#allocation5 + $0x74] ss:$8 sps:$4 sm:$0xff]   ;;  %v562_v16 = vcombine.high %v67_v14, %v67_v14  ;;  %v667_v17 = vld [vmem:[#allocation5 + $0x70] ss:$8 sps:$4 sm:$0xff]   ;;  %v674_v22 = vld [vmem:[#allocation5 + $0xa4] ss:$8 sps:$4 sm:$0xff]   ;;  %v561_v34 = vcombine.low %v67_v14, %v67_v14 }
  0x3e   :  { %283 = vmatprep.subr.bf16.mxu0 %v650_v4  ;;  %v671_v20 = vld [vmem:[#allocation5 + $0x94] ss:$8 sps:$4 sm:$0xff]   ;;  %v673_v21 = vld [vmem:[#allocation5 + $0x90] ss:$8 sps:$4 sm:$0xff]   ;;  %v676_v23 = vld [vmem:[#allocation5 + $0xa0] ss:$8 sps:$4 sm:$0xff]  }
  0x3f   :  { %311 = vmatprep.mubr.bf16.mxu0 %v562_v16  ;;  %v677_v24 = vld [vmem:[#allocation5 + $0xb4] ss:$8 sps:$4 sm:$0xff]   ;;  %v679_v25 = vld [vmem:[#allocation5 + $0xb0] ss:$8 sps:$4 sm:$0xff]   ;;  %v680_v26 = vld [vmem:[#allocation5 + $0xc4] ss:$8 sps:$4 sm:$0xff]  }
  0x40   :  { %v682_v27 = vld [vmem:[#allocation5 + $0xc0] ss:$8 sps:$4 sm:$0xff]   ;;  %v683_v28 = vld [vmem:[#allocation5 + $0xd4] ss:$8 sps:$4 sm:$0xff]   ;;  %v685_v29 = vld [vmem:[#allocation5 + $0xd0] ss:$8 sps:$4 sm:$0xff]  }
  0x41   :  { %284 = vmatpush1.bf16.msra.mxu0 %v652_v5  ;;  %v686_v30 = vld [vmem:[#allocation5 + $0xe4] ss:$8 sps:$4 sm:$0xff]   ;;  %v688_v31 = vld [vmem:[#allocation5 + $0xe0] ss:$8 sps:$4 sm:$0xff]   ;;  %v689_v32 = vld [vmem:[#allocation5 + $0xf4] ss:$8 sps:$4 sm:$0xff]  }
  0x42   :  { %285 = vmatprep.subr.bf16.mxu0 %v653_v6  ;;  %v691_v33 = vld [vmem:[#allocation5 + $0xf0] ss:$8 sps:$4 sm:$0xff]   ;;  %v694_v35 = vld [vmem:[#allocation7 + $0x40] sm:$0xff]   ;;  %v696_v37 = vld [vmem:[#allocation7 + $0x48] sm:$0xff]   ;;  %v104_v53 = vsub.s32 0, %v103_v52  ;;  %v108_v55 = vsub.s32 1, %v103_v52 }
  0x43   :  { %v695_v36 = vld [vmem:[#allocation7] sm:$0xff]   ;;  %614 = vmatprep.subr.bf16.mxu1 %v694_v35  ;;  %v697_v38 = vld [vmem:[#allocation7 + $0x8] sm:$0xff]   ;;  %v698_v39 = vld [vmem:[#allocation7 + $0x50] sm:$0xff]   ;;  %s817_s21 = smov [#allocation8]  }
  0x44   :  { %615 = vmatpush3.bf16.msra.mxu1 %v695_v36  ;;  %v699_v40 = vld [vmem:[#allocation7 + $0x10] sm:$0xff]   ;;  %v700_v41 = vld [vmem:[#allocation7 + $0x58] sm:$0xff]   ;;  %v702_v43 = vld [vmem:[#allocation7 + $0x60] sm:$0xff]   ;;  %s551_s22 = sshll.u32 %s817_s21, 4  ;;  %s552_s22 = int_to_ptr.vmem [resolvable:$true] %s551_s22 }
  0x45   :  { %286 = vmatpush1.bf16.msra.mxu0 %v655_v7  ;;  %616 = vmatprep.subr.bf16.mxu1 %v696_v37  ;;  %v701_v42 = vld [vmem:[#allocation7 + $0x18] sm:$0xff]   ;;  %v703_v44 = vld [vmem:[#allocation7 + $0x20] sm:$0xff]   ;;  %v704_v45 = vld [vmem:[#allocation7 + $0x68] sm:$0xff]   ;;  %s782_s23 = scalar_lea.vmem %s552_s22, 64  ;;  %p787_p11 = scmp.lt.s32.totalorder %s552_s22, %s552_s22 }
  0x46   :  { %287 = vmatprep.subr.bf16.mxu0 %v656_v8  ;;  %v705_v46 = vld [vmem:[#allocation7 + $0x28] sm:$0xff]   ;;  %v706_v47 = vld [vmem:[#allocation7 + $0x70] sm:$0xff]   ;;  %v708_v49 = vld [vmem:[#allocation7 + $0x78] sm:$0xff]   ;;  %p783_p10 = scmp.ne.s32.totalorder %s552_s22, %s782_s23  ;;  %p788_p12 = scmp.lt.s32.totalorder %s782_s23, %s782_s23 }
  0x47   :  { %v707_v48 = vld [vmem:[#allocation7 + $0x30] sm:$0xff]   ;;  %v709_v50 = vld [vmem:[#allocation7 + $0x38] sm:$0xff]  }
  0x48   :  { %617 = vmatpush3.bf16.msra.mxu1 %v697_v38  ;;  %v100_v54 = vld [vmem:[%s920_s2] sm:$0x3]  ;;  %p789_p13 = por %p788_p12, %p787_p11 }
  0x49   :  { %288 = vmatpush1.bf16.msra.mxu0 %v658_v9  ;;  %618 = vmatprep.subr.bf16.mxu1 %v698_v39  ;;  %v105_v56 = vrot.slane %v100_v54, %v104_v53  ;;  %v109_v57 = vrot.slane %v100_v54, %v108_v55  ;;  %v612_v35 = vld [vmem:[%s923_s5] ss:$0 sm:$0xff] }
  0x4a   :  { %289 = vmatprep.subr.bf16.mxu0 %v659_v10  ;;  %v613_v37 = vld [vmem:[%s924_s6] ss:$0 sm:$0xff]  ;;  %p790_p0 = pnand %p789_p13, %p783_p10 }
  0x4c   :  { %619 = vmatpush3.bf16.msra.mxu1 %v699_v40 }
  0x4d   :  { %290 = vmatpush1.bf16.msra.mxu0 %v661_v11  ;;  %620 = vmatprep.subr.bf16.mxu1 %v700_v41 }
  0x4e   :  { %291 = vmatprep.subr.bf16.mxu0 %v662_v12 }
  0x50   :  { %621 = vmatpush3.bf16.msra.mxu1 %v701_v42 }
  0x51   :  { %292 = vmatpush1.bf16.msra.mxu0 %v664_v13  ;;  %622 = vmatprep.subr.bf16.mxu1 %v702_v43 }
  0x52   :  { %293 = vmatprep.subr.bf16.mxu0 %v665_v15 }
  0x54   :  { %623 = vmatpush3.bf16.msra.mxu1 %v703_v44 }
  0x55   :  { %294 = vmatpush1.bf16.msra.mxu0 %v667_v17  ;;  %624 = vmatprep.subr.bf16.mxu1 %v704_v45 }
  0x56   :  { %295 = vmatprep.subr.bf16.mxu0 %v668_v18 }
  0x58   :  { %625 = vmatpush3.bf16.msra.mxu1 %v705_v46 }
  0x59   :  { %296 = vmatpush1.bf16.msra.mxu0 %v670_v19  ;;  %626 = vmatprep.subr.bf16.mxu1 %v706_v47 }
  0x5a   :  { %297 = vmatprep.subr.bf16.mxu0 %v671_v20 }
  0x5c   :  { %627 = vmatpush3.bf16.msra.mxu1 %v707_v48 }
  0x5d   :  { %298 = vmatpush1.bf16.msra.mxu0 %v673_v21  ;;  %628 = vmatprep.subr.bf16.mxu1 %v708_v49 }
  0x5e   :  { %299 = vmatprep.subr.bf16.mxu0 %v674_v22  ;;  %v595_v22 = vld [vmem:[%s922_s4] ss:$0 sm:$0xff] }
  0x60   :  { %629 = vmatpush3.bf16.msra.mxu1 %v709_v50 }
  0x61   :  { %300 = vmatpush1.bf16.msra.mxu0 %v676_v23 }
  0x62   :  { %301 = vmatprep.subr.bf16.mxu0 %v677_v24 }
  0x65   :  { %302 = vmatpush1.bf16.msra.mxu0 %v679_v25 }
  0x66   :  { %303 = vmatprep.subr.bf16.mxu0 %v680_v26 }
  0x69   :  { %304 = vmatpush1.bf16.msra.mxu0 %v682_v27 }
  0x6a   :  { %305 = vmatprep.subr.bf16.mxu0 %v683_v28 }
  0x6d   :  { %306 = vmatpush1.bf16.msra.mxu0 %v685_v29 }
  0x6e   :  { %307 = vmatprep.subr.bf16.mxu0 %v686_v30 }
  0x71   :  { %308 = vmatpush1.bf16.msra.mxu0 %v688_v31 }
  0x72   :  { %309 = vmatprep.subr.bf16.mxu0 %v689_v32 }
  0x75   :  { %310 = vmatpush1.bf16.msra.mxu0 %v691_v33 }
  0x78   :  { %312 = vmatmul.mubr.bf16.vlgmr.msra.gmra.mrb[0].mxu0 %v561_v34 }
 0x14b   :  { %v313_v58 = vpop.f32.mrb[0].mxu0 }
 0x14c   :  { %v314_v59 = vadd.f32 %v313_v58, %v105_v56  ;;  %v315_v60 = vpop.f32.mrb[1].mxu0 }
 0x14d   :  { %v316_v61 = vadd.f32 %v315_v60, %v109_v57  ;;  %v317_v62 = vpop.f32.mrb[2].mxu0 }
 0x14e   :  { %v320_v63 = vmul.f32 0.044715, %v314_v59  ;;  %v318_v0 = vpop.f32.mrb[3].mxu0  ;;  %v330_v12 = vmul.f32 0.5, %v314_v59 }
 0x14f   :  { %v321_v1 = vmul.f32 0.044715, %v316_v61  ;;  %v331_v14 = vmul.f32 0.5, %v316_v61 }
 0x150   :  { %v322_v2 = vmul.f32 %v320_v63, %v314_v59 }
 0x151   :  { %v323_v3 = vmul.f32 %v321_v1, %v316_v61 }
 0x152   :  { %v324_v4 = vmul.f32 %v322_v2, %v314_v59 }
 0x153   :  { %v325_v5 = vmul.f32 %v323_v3, %v316_v61 }
 0x154   :  { %v326_v6 = vadd.f32 %v324_v4, %v314_v59 }
 0x155   :  { %v327_v7 = vadd.f32 %v325_v5, %v316_v61 }
 0x156   :  { %v328_v8 = vmul.f32 0.7978846, %v326_v6 }
 0x157   :  { %v329_v9 = vmul.f32 0.7978846, %v327_v7 }
 0x158   :  { %710 = vtanh.f32 %v328_v8 }
 0x159   :  { %712 = vtanh.f32 %v329_v9 }
 0x162   :  { %v711_v10 = vpop.eup %710 }
 0x163   :  { %v713_v11 = vpop.eup %712  ;;  %v334_v13 = vadd.f32 1.0, %v711_v10 }
 0x164   :  { %v335_v15 = vadd.f32 1.0, %v713_v11 }
 0x165   :  { %v336_v16 = vmul.f32 %v334_v13, %v330_v12 }
 0x166   :  { %v337_v17 = vmul.f32 %v335_v15, %v331_v14 }
 0x167   :  { %v338_v19 = vpack.c.bf16 %v336_v16, %v336_v16 }
 0x168   :  { %v339_v18 = vpack.c.bf16 %v337_v17, %v337_v17 }
 0x16a   :  { %507 = vmatprep.mubr.bf16.mxu1 %v339_v18 }
 0x16b   :  { %508 = vmatmul.mubr.bf16.vlgmr.msra.gmra.mrb[0].mxu1 %v338_v19 }
 0x23e   :  { %v630_v20 = vpop.f32.mrb[0].mxu1 }
 0x23f   :  { %v631_v21 = vpop.f32.mrb[1].mxu1 }
 0x240   :  { %v632_v23 = vadd.f32 %v631_v21, %v630_v20  ;;  %v633_v24 = vpop.f32.mrb[2].mxu1 }
 0x241   :  { %v634_v25 = vpop.f32.mrb[3].mxu1 }
 0x242   :  { %v510_v26 = vadd.f32 %v632_v23, %v595_v22 }
 0x244   :  { %515 = vadd.xlane.f32.xlu0 %v510_v26 }
 0x2d1   :  { %v516_v27 = vpop.xlane.xlu0 %515 }
 0x2d2   :  { %v518_v28 = vmul.f32 0.0078125, %v516_v27 }
 0x2d4   :  { %v519_v29 = vsub.f32 %v510_v26, %v518_v28 }
 0x2d6   :  { %v520_v30 = vmul.f32 %v519_v29, %v519_v29 }
 0x2d8   :  { %521 = vadd.xlane.f32.xlu0 %v520_v30 }
 0x365   :  { %v522_v31 = vpop.xlane.xlu0 %521 }
 0x366   :  { %v523_v32 = vmul.f32 0.0078125, %v522_v31 }
 0x368   :  { %v524_v33 = vadd.f32 1e-05, %v523_v32 }
 0x36a   :  { %714 = vrsqrt.f32 %v524_v33 }
 0x374   :  { %v715_v34 = vpop.eup %714 }
 0x375   :  { %v526_v36 = vmul.f32 %v715_v34, %v519_v29 }
 0x377   :  { %v534_v38 = vmul.f32 %v612_v35, %v526_v36 }
 0x379   :  { %v542_v39 = vadd.f32 %v613_v37, %v534_v38 }
 0x37b   :  { %v543_v40 = vpack.c.bf16 %v542_v39, %v542_v39 }
 0x37d   :  { %544 = vst [vmem:[#allocation8] sm:$0xf] %v543_v40 }
 0x37e   :  { %793 = shalt.err (!%p790_p0)
}
 0x37f   :  { %s794_s26 = scalar_lea.hbm %s925_s7, 64 }
 0x380   :  { %p795_p1 = scmp.ne.s32.totalorder %s925_s7, %s794_s26  ;;  %p798_p2 = scmp.lt.u32.totalorder %s794_s26, %s925_s7 }
 0x382   :  { %p800_p3 = pnand %p798_p2, %p795_p1 }
 0x384   :  { %803 = shalt.err (!%p800_p3)
}
 0x385   :  { %554 = dma.vmem_to_hbm [thread:$0]  %s552_s22, 64, %s925_s7, [#allocation4]  }
 0x386   :  { %808 = dma.done.wait [#allocation4], 64  }
 0x387   :  { %809 = vsyncadd [#allocation4], 4294967232 }
 0x388   :  { %558 = vsyncpa [#allocation3], 1 }
 0x389   :  { %559 = vsyncpa [#allocation6], 1 }
 0x38a   :  { %560 = vsyncpa [#allocation4], 1 }

</bundles_post_ra>
